<compile_context>
chip_gen: v5e
topology: v5e:2x2
jax: 0.10.0
libtpu: 0.0.40
codegen_flags: <defaults>
</compile_context>

<pallas_src>
import math

import jax
import jax.numpy as jnp
from jax.experimental import pallas as pl
from jax.experimental.pallas import tpu as pltpu

_LANE = 128
_SUBLANE = 8


def _cdiv(a, b):
    return -(-a // b)


def _round_up(a, m):
    return _cdiv(a, m) * m


def _scale_kernel(f_ref, x_ref, o_ref):
    # f_ref: (1, TR, L); x_ref/o_ref: (TB, TR, L). Broadcast factor over batch;
    # jnp promotion handles mixed factor/x dtypes (torch semantics).
    o_ref[...] = (x_ref[...] * f_ref[...]).astype(o_ref.dtype)


def _choose_tiles(B, R, lane_pad, item_bytes, target_block_bytes):
    """Pick (tb, tr) block dims for a (B, R, L) view.

    tr is a multiple of 8 (or == R); tb is unconstrained (leading dim).
    Budgets use the VMEM-padded footprint (sublanes -> 8, lanes -> 128)."""
    budget_elems = max(_SUBLANE * lane_pad, target_block_bytes // item_bytes)
    if R <= _SUBLANE:
        tr = R
        tb = min(B, max(1, budget_elems // (_SUBLANE * lane_pad)))
    else:
        rows_full_batch = budget_elems // (B * lane_pad)
        if rows_full_batch >= R:
            tb, tr = B, R
        elif rows_full_batch >= _SUBLANE:
            tb, tr = B, (rows_full_batch // _SUBLANE) * _SUBLANE
        else:
            tr = _SUBLANE
            tb = min(B, max(1, budget_elems // (_SUBLANE * lane_pad)))
    return tb, tr


def _adjust_steps(B, R, tb, tr, x_total_bytes):
    """For large inputs: ensure >=2 grid steps and prefer an even total step
    count so v7x's two TensorCores split the 'parallel' grid evenly."""
    big = x_total_bytes >= (4 << 20)
    steps_r, steps_b = _cdiv(R, tr), _cdiv(B, tb)
    if big and steps_r * steps_b == 1:
        if R >= 2 * _SUBLANE:
            tr = min(R, _round_up(_cdiv(R, 2), _SUBLANE))
        elif B >= 2:
            tb = _cdiv(B, 2)
        steps_r, steps_b = _cdiv(R, tr), _cdiv(B, tb)
    total = steps_r * steps_b
    if total > 1 and total % 2 == 1:
        if steps_r > 1 and R > _SUBLANE:
            new_tr = _round_up(_cdiv(R, steps_r + 1), _SUBLANE)
            if _cdiv(R, new_tr) % 2 == 0:
                tr = new_tr
        elif steps_b > 1:
            new_tb = max(1, _cdiv(B, steps_b + 1))
            if _cdiv(B, new_tb) % 2 == 0:
                tb = new_tb
    return tb, tr


def scale_forward(factor, x, *, target_block_bytes=8 << 20, vmem_cap_bytes=48 << 20):
    """out = factor * x; factor shaped like x.shape[1:] (broadcast over batch)."""
    assert factor.shape == tuple(x.shape[1:]), "factor must match per-sample shape"
    B = x.shape[0]
    feat = math.prod(x.shape[1:])
    out_dtype = jnp.result_type(x.dtype, factor.dtype)  # torch promotion rules

    if B == 0 or feat == 0:
        return (factor * x).astype(out_dtype)

    # Free, row-major reshapes only: lane-dense view when 128-aligned, else a
    # (B, 1, feat) view whose full last dim is a legal BlockSpec dim.
    if feat % _LANE == 0:
        R, L = feat // _LANE, _LANE
    else:
        R, L = 1, feat
    lane_pad = _round_up(L, _LANE)

    in_item = jnp.dtype(x.dtype).itemsize
    f_item = jnp.dtype(factor.dtype).itemsize
    out_item = jnp.dtype(out_dtype).itemsize

    tb, tr = _choose_tiles(B, R, lane_pad, max(in_item, out_item), target_block_bytes)
    tb, tr = _adjust_steps(B, R, tb, tr, B * feat * in_item)

    # VMEM budget: double-buffered x + out + factor blocks (padded footprint).
    tr_pad = _round_up(tr, _SUBLANE)
    x_blk = tb * tr_pad * lane_pad * in_item
    o_blk = tb * tr_pad * lane_pad * out_item
    f_blk = tr_pad * lane_pad * f_item
    vmem_needed = 2 * (x_blk + o_blk + f_blk)
    if vmem_needed > vmem_cap_bytes - (4 << 20):
        # Pathological shape (e.g. huge feature dim that is not a multiple of
        # 128): graceful fallback to the XLA elementwise multiply instead of
        # risking a VMEM-limit compile failure.
        return (factor * x).astype(out_dtype)
    vmem_limit = int(min(max(vmem_needed + (8 << 20), 24 << 20), vmem_cap_bytes))

    x3 = x.reshape(B, R, L)
    f3 = factor.reshape(1, R, L)
    steps_r, steps_b = _cdiv(R, tr), _cdiv(B, tb)

    out = pl.pallas_call(
        _scale_kernel,
        out_shape=jax.ShapeDtypeStruct((B, R, L), out_dtype),
        grid_spec=pltpu.PrefetchScalarGridSpec(
            num_scalar_prefetch=0,
            grid=(steps_r, steps_b),  # batch innermost: factor block is reused
            in_specs=[
                pl.BlockSpec((1, tr, L), lambda r, b: (0, r, 0)),   # factor
                pl.BlockSpec((tb, tr, L), lambda r, b: (b, r, 0)),  # x
            ],
            out_specs=pl.BlockSpec((tb, tr, L), lambda r, b: (b, r, 0)),
        ),
        compiler_params=pltpu.CompilerParams(
            dimension_semantics=("parallel", "parallel"),
            vmem_limit_bytes=vmem_limit,
        ),
    )(f3, x3)

    return out.reshape(x.shape)


if __name__ == "__main__":
    B, C, H, W = 2, 4, 16, 16
    key = jax.random.PRNGKey(0)
    kx, kx2, kf2 = jax.random.split(key, 3)

    x = jax.random.normal(kx, (B, C, H, W), dtype=jnp.float32)
    # Parameter init matches torch.nn.Parameter(torch.Tensor(np.ones(input_shape)))
    factor = jnp.ones((C, H, W), dtype=jnp.float32)

    out = jax.block_until_ready(scale_forward(factor, x))
    assert out.shape == x.shape and out.dtype == x.dtype
    assert jnp.allclose(out, factor[None, ...] * x), "mismatch vs reference (ones factor)"

    # Non-trivial factor + feature size NOT a multiple of 128: exercises the
    # full-extent-lane path (no padding, no extra HBM copies).
    x_b = jax.random.normal(kx2, (2, 3, 5, 7), dtype=jnp.float32)
    f_b = jax.random.normal(kf2, (3, 5, 7), dtype=jnp.float32)
    out_b = jax.block_until_ready(scale_forward(f_b, x_b))
    assert jnp.allclose(out_b, f_b[None, ...] * x_b), "mismatch vs reference (unaligned)"

    print("KERNEL_OK")
</pallas_src>

<mosaic_0001>
module attributes {stable_mosaic.version = 11 : i64} {
  func.func @_scale_kernel(%arg0: i32, %arg1: i32, %arg2: memref<1x8x128xf32, #tpu.memory_space<vmem>>, %arg3: memref<2x8x128xf32, #tpu.memory_space<vmem>>, %arg4: memref<2x8x128xf32, #tpu.memory_space<vmem>>) attributes {dimension_semantics = [#tpu.dimension_semantics<parallel>, #tpu.dimension_semantics<parallel>], iteration_bounds = array<i64: 1, 1>, scalar_prefetch = 0 : i64, scratch_operands = 0 : i64, tpu.core_type = #tpu.core_type<tc>, window_params = [{transform_indices = @transform_0, window_bounds = array<i64: 1, 8, 128>}, {transform_indices = @transform_1, window_bounds = array<i64: 2, 8, 128>}, {transform_indices = @transform_2, window_bounds = array<i64: 2, 8, 128>}]} {
    %c0 = arith.constant 0 : index
    %c0_0 = arith.constant 0 : index
    %c0_1 = arith.constant 0 : index
    %0 = vector.load %arg3[%c0, %c0_0, %c0_1] : memref<2x8x128xf32, #tpu.memory_space<vmem>>, vector<2x8x128xf32>
    %c0_2 = arith.constant 0 : index
    %c0_3 = arith.constant 0 : index
    %c0_4 = arith.constant 0 : index
    %1 = vector.load %arg2[%c0_2, %c0_3, %c0_4] : memref<1x8x128xf32, #tpu.memory_space<vmem>>, vector<1x8x128xf32>
    %2 = vector.broadcast %1 : vector<1x8x128xf32> to vector<2x8x128xf32>
    %3 = arith.mulf %0, %2 : vector<2x8x128xf32>
    %c0_5 = arith.constant 0 : index
    %c0_6 = arith.constant 0 : index
    %c0_7 = arith.constant 0 : index
    %4 = vector.load %arg4[%c0_5, %c0_6, %c0_7] : memref<2x8x128xf32, #tpu.memory_space<vmem>>, vector<2x8x128xf32>
    tpu.vector_store %arg4[%c0_5, %c0_6, %c0_7], %3 {strides = array<i32>} : memref<2x8x128xf32, #tpu.memory_space<vmem>>, vector<2x8x128xf32>,
    return
  }
  func.func @transform_0(%arg0: i32, %arg1: i32) -> (i32, i32, i32) {
    %c0_i32 = arith.constant 0 : i32
    %c0_i32_0 = arith.constant 0 : i32
    %c0_i32_1 = arith.constant 0 : i32
    return %c0_i32, %arg0, %c0_i32_0 : i32, i32, i32
  }
  func.func @transform_1(%arg0: i32, %arg1: i32) -> (i32, i32, i32) {
    %c0_i32 = arith.constant 0 : i32
    %c0_i32_0 = arith.constant 0 : i32
    return %arg1, %arg0, %c0_i32 : i32, i32, i32
  }
  func.func @transform_2(%arg0: i32, %arg1: i32) -> (i32, i32, i32) {
    %c0_i32 = arith.constant 0 : i32
    %c0_i32_0 = arith.constant 0 : i32
    return %arg1, %arg0, %c0_i32 : i32, i32, i32
  }
}

</mosaic_0001>

<bundles_post_ra>
// kernel: tpu_custom_call.1
= control target key start
LH: loop header
LB: loop body
LE: loop exit
PB: predicated region body
PF: predicated region fallthrough
CT: control target
= control target key end

     0   :  { %7 = vsyncpa [#allocation3], 0  ;;  %s181_s0 = inlined_call_operand.hbm [shape: f32[1,8,128], index: 0, kind: input, shape index: {}]   ;;  %s182_s1 = inlined_call_operand.hbm [shape: f32[2,8,128], index: 1, kind: input, shape index: {}]   ;;  %s183_s2 = inlined_call_operand.hbm [shape: f32[2,8,128], index: 2, kind: output, shape index: {}]  }
   0x1   :  { %8 = vsyncpa [#allocation6], 0 }
   0x2   :  { %9 = vsyncpa [#allocation4], 0  ;;  %s15_s11 = sshll.u32 %s181_s0, 4  ;;  %s152_s12 = smov [#allocation2]   ;;  %s16_s11 = int_to_ptr.hbm [resolvable:$true] %s15_s11 }
   0x3   :  { %s17_s13 = sshll.u32 %s152_s12, 4  ;;  %s25_s16 = sshll.u32 %s182_s1, 4  ;;  %s18_s13 = int_to_ptr.vmem [resolvable:$true] %s17_s13  ;;  %s26_s16 = int_to_ptr.hbm [resolvable:$true] %s25_s16 }
   0x4   :  { %20 = dma.hbm_to_vmem [thread:$0]  %s16_s11, 128, %s18_s13, [#allocation3]  }
   0x5   :  { %s153_s17 = smov [#allocation5]   ;;  %s154_s19 = smov 128  }
   0x6   :  { %s27_s18 = sshll.u32 %s153_s17, 4  ;;  %s155_s20 = smov 8   ;;  %s28_s18 = int_to_ptr.vmem [resolvable:$true] %s27_s18 }
   0x7   :  { %33 = dma.hbm_to_vmem [thread:$0]  %s26_s16, 256, %s28_s18, [#allocation6], %s154_s19, %s154_s19, %s155_s20  }
   0x8   :  { %146 = dma.done.wait [#allocation3], 128  }
   0x9   :  { %147 = vsyncadd [#allocation3], 4294967168 }
   0xa   :  { %148 = dma.done.wait [#allocation6], 256  }
   0xb   :  { %149 = vsyncadd [#allocation6], 4294967040  ;;  %s156_s0 = smov [#allocation7]   ;;  %s55_s24 = sshll.u32 %s183_s2, 4  ;;  %v42_v0 = vld [vmem:[#allocation5] sm:$0xff]  ;;  %v44_v1 = vld [vmem:[#allocation2] sm:$0xff]  ;;  %s56_s24 = int_to_ptr.hbm [resolvable:$true] %s55_s24 }
   0xc   :  { %s53_s21 = sshll.u32 %s156_s0, 4  ;;  %v43_v2 = vld [vmem:[#allocation5 + $0x8] sm:$0xff]  ;;  %v45_v3 = vmul.f32 %v44_v1, %v42_v0  ;;  %s54_s21 = int_to_ptr.vmem [resolvable:$true] %s53_s21 }
   0xd   :  { %v46_v4 = vmul.f32 %v44_v1, %v43_v2 }
   0xe   :  { %47 = vst [vmem:[#allocation7] sm:$0xff] %v45_v3 }
   0xf   :  { %48 = vst [vmem:[#allocation7 + $0x8] sm:$0xff] %v46_v4 }
  0x10   :  { %61 = dma.vmem_to_hbm [thread:$0]  %s54_s21, 256, %s56_s24, [#allocation4], %s154_s19, %s154_s19, %s155_s20  }
  0x11   :  { %150 = dma.done.wait [#allocation4], 256  }
  0x12   :  { %151 = vsyncadd [#allocation4], 4294967040 }
  0x13   :  { %66 = vsyncpa [#allocation3], 1 }
  0x14   :  { %67 = vsyncpa [#allocation6], 1 }
  0x15   :  { %68 = vsyncpa [#allocation4], 1 }

</bundles_post_ra>
